<compile_context>
chip_gen: v7x
topology: tpu7x:2x2x1
jax: 0.10.0
libtpu: 0.0.40
codegen_flags: <defaults>
</compile_context>

<pallas_src>
import jax
import jax.numpy as jnp
from jax import lax
from jax.experimental import pallas as pl
from jax.experimental.pallas import tpu as pltpu


def _pick_b_tile(B, T, n_embd, bytes_per_el, target_bytes=2 << 20):
    """Largest divisor of B such that one tile (B_TILE * T * n_embd) stays near target_bytes."""
    per_seq = max(1, T * n_embd * bytes_per_el)
    cap = max(1, min(B, target_bytes // per_seq))
    for bt in range(int(cap), 0, -1):
        if B % bt == 0:
            return bt
    return 1


def _make_clip_embed_kernel(B_TILE, T, n_embd):
    ROWS = B_TILE * T  # tokens handled per grid step

    def kernel(tok_ids_ref, tok_emb_hbm, pos_ref, out_ref, buf, sem):
        # tok_ids_ref : (B*T,) int32 in SMEM (scalar-prefetched token ids, flattened)
        # tok_emb_hbm : (n_vocab, n_embd) raw HBM ref (memory_space=pl.ANY)
        # pos_ref     : (T, n_embd) VMEM-resident positional table (fetched once)
        # out_ref     : (ROWS, n_embd) lane/sublane-dense output block
        # buf         : (ROWS, n_embd) VMEM gather scratch
        # sem         : scalar DMA semaphore shared by all row copies of this tile
        base = pl.program_id(0) * ROWS

        # Issue all row-gather DMAs for this tile (they overlap in flight).
        def _issue(j, carry):
            tok = tok_ids_ref[base + j]
            pltpu.make_async_copy(
                tok_emb_hbm.at[pl.ds(tok, 1), :],
                buf.at[pl.ds(j, 1), :],
                sem,
            ).start()
            return carry

        lax.fori_loop(0, ROWS, _issue, 0)

        # Wait for every row copy (all on the same semaphore, one wait per copy).
        def _wait(j, carry):
            pltpu.make_async_copy(
                tok_emb_hbm.at[pl.ds(0, 1), :],
                buf.at[pl.ds(j, 1), :],
                sem,
            ).wait()
            return carry

        lax.fori_loop(0, ROWS, _wait, 0)

        gathered = buf[...]                                   # (ROWS, n_embd)
        pos = jnp.tile(pos_ref[...], (B_TILE, 1))             # (ROWS, n_embd)
        out_ref[...] = (gathered + pos).astype(out_ref.dtype)

    return kernel


def clip_embedding(tokens, token_embedding, positional_embedding):
    """tokens: (B, T) int; token_embedding: (n_vocab, n_embd); positional_embedding: (n_tokens, n_embd).

    Returns (B, T, n_embd), matching CLIPEmbedding.forward (requires T == n_tokens).
    """
    B, T = tokens.shape
    n_vocab, n_embd = token_embedding.shape
    n_tokens, n_embd_p = positional_embedding.shape
    assert T == n_tokens, "positional embedding broadcast requires seq_len == n_tokens"
    assert n_embd == n_embd_p

    dtype = token_embedding.dtype
    bytes_per_el = jnp.dtype(dtype).itemsize
    B_TILE = _pick_b_tile(B, T, n_embd, bytes_per_el)
    ROWS = B_TILE * T
    num_tiles = B // B_TILE

    kernel = _make_clip_embed_kernel(B_TILE, T, n_embd)

    grid_spec = pltpu.PrefetchScalarGridSpec(
        num_scalar_prefetch=1,  # flattened token ids -> SMEM
        grid=(num_tiles,),
        in_specs=[
            # vocab table: stays in HBM, gathered manually via DMA.
            pl.BlockSpec(memory_space=pl.ANY),
            # positional table: whole array, constant block index -> VMEM-resident, one fetch.
            pl.BlockSpec((n_tokens, n_embd), lambda i, tok: (0, 0)),
        ],
        # Flattened, lane/sublane-dense output slab; reshaped to (B, T, n_embd) in wrapper.
        out_specs=pl.BlockSpec((ROWS, n_embd), lambda i, tok: (i, 0)),
        scratch_shapes=[
            pltpu.VMEM((ROWS, n_embd), dtype),
            pltpu.SemaphoreType.DMA(()),
        ],
    )

    out_flat = pl.pallas_call(
        kernel,
        out_shape=jax.ShapeDtypeStruct((B * T, n_embd), dtype),
        grid_spec=grid_spec,
        compiler_params=pltpu.CompilerParams(
            # Each step is self-contained -> safe to shard across TensorCores (v7x megacore).
            dimension_semantics=("parallel",),
        ),
    )(tokens.astype(jnp.int32).reshape(-1), token_embedding, positional_embedding)

    return out_flat.reshape(B, T, n_embd)


if __name__ == "__main__":
    # Small shapes consistent with the module: n_vocab=64, n_embd=128, n_tokens=8, batch=2.
    n_vocab, n_embd, n_tokens, batch = 64, 128, 8, 2

    key = jax.random.PRNGKey(0)
    k_tok, k_emb, k_pos = jax.random.split(key, 3)

    token_embedding = jax.random.normal(k_emb, (n_vocab, n_embd), dtype=jnp.float32)
    positional_embedding = 0.02 * jax.random.normal(k_pos, (n_tokens, n_embd), dtype=jnp.float32)
    tokens = jax.random.randint(k_tok, (batch, n_tokens), 0, n_vocab, dtype=jnp.int32)

    out = clip_embedding(tokens, token_embedding, positional_embedding)
    out = jax.block_until_ready(out)

    # Pure-JAX reference: embedding lookup + broadcast add (PyTorch semantics).
    ref = jnp.take(token_embedding, tokens, axis=0) + positional_embedding[None, :, :]

    assert out.shape == (batch, n_tokens, n_embd)
    assert out.dtype == jnp.float32
    assert jnp.allclose(out, ref, atol=1e-6, rtol=1e-6)

    print("KERNEL_OK")
</pallas_src>

<mosaic_0001>
module attributes {stable_mosaic.version = 11 : i64} {
  func.func @kernel(%arg0: i32, %arg1: memref<16xi32, #tpu.memory_space<smem>>, %arg2: memref<64x128xf32, #tpu.memory_space<any>>, %arg3: memref<8x128xf32, #tpu.memory_space<vmem>>, %arg4: memref<16x128xf32, #tpu.memory_space<vmem>>, %arg5: memref<16x128xf32, #tpu.memory_space<vmem>>, %arg6: memref<!tpu.dma_semaphore, #tpu.memory_space<semaphore_mem>>) attributes {dimension_semantics = [#tpu.dimension_semantics<parallel>], iteration_bounds = array<i64: 1>, scalar_prefetch = 1 : i64, scratch_operands = 2 : i64, tpu.core_type = #tpu.core_type<tc>, window_params = [{}, {pipeline_mode = #tpu.pipeline_mode<synchronous>, transform_indices = @transform_1, window_bounds = array<i64: 8, 128>}, {transform_indices = @transform_2, window_bounds = array<i64: 16, 128>}]} {
    %c16_i32 = arith.constant 16 : i32
    %0 = arith.muli %arg0, %c16_i32 : i32
    %c0_i32 = arith.constant 0 : i32
    %c16_i32_0 = arith.constant 16 : i32
    %1 = arith.addi %c0_i32, %c16_i32_0 : i32
    %c1_i32 = arith.constant 1 : i32
    scf.for %arg7 = %c0_i32 to %1 step %c1_i32  : i32 {
      %8 = arith.addi %0, %arg7 : i32
      %9 = arith.index_cast %8 : i32 to index
      %10 = memref.load %arg1[%9] : memref<16xi32, #tpu.memory_space<smem>>
      %c0_i32_11 = arith.constant 0 : i32
      %11 = tpu.memref_slice %arg2[%10, %c0_i32_11] : memref<64x128xf32, #tpu.memory_space<any>> -> memref<1x128xf32, #tpu.memory_space<any>>
      %c0_i32_12 = arith.constant 0 : i32
      %12 = tpu.memref_slice %arg5[%arg7, %c0_i32_12] : memref<16x128xf32, #tpu.memory_space<vmem>> -> memref<1x128xf32, #tpu.memory_space<vmem>>
      tpu.enqueue_dma source(%11 : memref<1x128xf32, #tpu.memory_space<any>>) target(%12 : memref<1x128xf32, #tpu.memory_space<vmem>>) target_semaphore(%arg6 : memref<!tpu.dma_semaphore, #tpu.memory_space<semaphore_mem>>)
    }
    %c16_i32_1 = arith.constant 16 : i32
    %c0_i32_2 = arith.constant 0 : i32
    %c16_i32_3 = arith.constant 16 : i32
    %2 = arith.addi %c0_i32_2, %c16_i32_3 : i32
    %c1_i32_4 = arith.constant 1 : i32
    scf.for %arg7 = %c0_i32_2 to %2 step %c1_i32_4  : i32 {
      %c0_i32_11 = arith.constant 0 : i32
      %c0_i32_12 = arith.constant 0 : i32
      %8 = tpu.memref_slice %arg2[%c0_i32_11, %c0_i32_12] : memref<64x128xf32, #tpu.memory_space<any>> -> memref<1x128xf32, #tpu.memory_space<any>>
      %c0_i32_13 = arith.constant 0 : i32
      %9 = tpu.memref_slice %arg5[%arg7, %c0_i32_13] : memref<16x128xf32, #tpu.memory_space<vmem>> -> memref<1x128xf32, #tpu.memory_space<vmem>>
      tpu.wait_dma2 semaphore(%arg6 : memref<!tpu.dma_semaphore, #tpu.memory_space<semaphore_mem>>) src(%8 : memref<1x128xf32, #tpu.memory_space<any>>) dst(%9 : memref<1x128xf32, #tpu.memory_space<vmem>>)
    }
    %c16_i32_5 = arith.constant 16 : i32
    %c0 = arith.constant 0 : index
    %c0_6 = arith.constant 0 : index
    %3 = vector.load %arg5[%c0, %c0_6] : memref<16x128xf32, #tpu.memory_space<vmem>>, vector<16x128xf32>
    %c0_7 = arith.constant 0 : index
    %c0_8 = arith.constant 0 : index
    %4 = vector.load %arg3[%c0_7, %c0_8] : memref<8x128xf32, #tpu.memory_space<vmem>>, vector<8x128xf32>
    %5 = tpu.concatenate %4, %4 in 0 : vector<8x128xf32>, vector<8x128xf32> -> vector<16x128xf32>
    %6 = arith.addf %3, %5 : vector<16x128xf32>
    %c0_9 = arith.constant 0 : index
    %c0_10 = arith.constant 0 : index
    %7 = vector.load %arg4[%c0_9, %c0_10] : memref<16x128xf32, #tpu.memory_space<vmem>>, vector<16x128xf32>
    tpu.vector_store %arg4[%c0_9, %c0_10], %6 {strides = array<i32>} : memref<16x128xf32, #tpu.memory_space<vmem>>, vector<16x128xf32>,
    return
  }
  func.func @transform_1(%arg0: i32, %arg1: memref<16xi32, #tpu.memory_space<smem>>) -> (i32, i32) {
    %c0_i32 = arith.constant 0 : i32
    %c0_i32_0 = arith.constant 0 : i32
    %c0_i32_1 = arith.constant 0 : i32
    return %c0_i32, %c0_i32_0 : i32, i32
  }
  func.func @transform_2(%arg0: i32, %arg1: memref<16xi32, #tpu.memory_space<smem>>) -> (i32, i32) {
    %c0_i32 = arith.constant 0 : i32
    %c0_i32_0 = arith.constant 0 : i32
    return %arg0, %c0_i32 : i32, i32
  }
}

</mosaic_0001>

<bundles_post_ra>
// kernel: tpu_custom_call.1
= control target key start
LH: loop header
LB: loop body
LE: loop exit
PB: predicated region body
PF: predicated region fallthrough
CT: control target
= control target key end

     0   :  { %s308_s0 = inlined_call_operand.hbm [shape: s32[16], index: 0, kind: input, shape index: {}]   ;;  %s309_s1 = inlined_call_operand.hbm [shape: f32[64,128], index: 1, kind: input, shape index: {}]   ;;  %s310_s2 = inlined_call_operand.hbm [shape: f32[8,128], index: 2, kind: input, shape index: {}]   ;;  %s311_s3 = inlined_call_operand.hbm [shape: f32[16,128], index: 3, kind: output, shape index: {}]  }
   0x1   :  { %s125_s14 = scalar_lea.hbm %s308_s0, 16 }
   0x2   :  { %p126_p0 = scmp.ne.s32.totalorder %s308_s0, %s125_s14  ;;  %p129_p1 = scmp.lt.u32.totalorder %s125_s14, %s308_s0 }
   0x4   :  { %p131_p2 = pnand %p129_p1, %p126_p0 }
   0x6   :  { %134 = shalt.err (!%p131_p2)  }
   0x7   :  { %s227_s19 = smov [#allocation5]  }
   0x8   :  { %9 = dma.hbm_to_smem %s308_s0, 16, %s227_s19, [#allocation4] }
   0x9   :  { %211 = dma.done.wait [#allocation4], 16 }
   0xa   :  { %212 = vsyncadd [#allocation4], 4294967280 }
   0xb   :  { %11 = sfence }
   0xc   :  { %12 = vsyncpa [#allocation7], 0 }
   0xd   :  { %13 = vsyncpa [#allocation8], 0  ;;  %s228_s22 = smov [#allocation6]   ;;  %s135_s26 = scalar_lea.hbm %s310_s2, 128 }
   0xe   :  { %s20_s23 = sshll.u32 %s228_s22, 4  ;;  %p136_p3 = scmp.ne.s32.totalorder %s310_s2, %s135_s26  ;;  %s21_s23 = int_to_ptr.vmem [resolvable:$true] %s20_s23 }
   0xf   :  { %p139_p4 = scmp.lt.u32.totalorder %s135_s26, %s310_s2 }
  0x11   :  { %p141_p5 = pnand %p139_p4, %p136_p3 }
  0x13   :  { %144 = shalt.err (!%p141_p5)
}
  0x14   :  { %s145_s0 = scalar_lea.vmem %s21_s23, 128  ;;  %p150_p7 = scmp.lt.s32.totalorder %s21_s23, %s21_s23 }
  0x15   :  { %p146_p6 = scmp.ne.s32.totalorder %s21_s23, %s145_s0  ;;  %p151_p8 = scmp.lt.s32.totalorder %s145_s0, %s145_s0 }
  0x17   :  { %p152_p9 = por %p151_p8, %p150_p7 }
  0x19   :  { %p153_p10 = pnand %p152_p9, %p146_p6 }
  0x1b   :  { %156 = shalt.err (!%p153_p10)
}
  0x1c   :  { %23 = dma.hbm_to_vmem [thread:$0]  %s310_s2, 128, %s21_s23, [#allocation7]  }
  0x1d   :  { %213 = dma.done.wait [#allocation7], 128  }
  0x1e   :  { %214 = vsyncadd [#allocation7], 4294967168  ;;  %s277_s6 = smov 0  }
  0x1f LB: > { %s35_s7 = sld [smem:[#allocation5 + %s221_s6]]  ;;  %s38_s8 = scalar_lea.vmem [#allocation2], %s221_s6  ;;  %s221_s6 = sphi %s277_s6, %s33_s6  }
  0x20   : > { %s46_s9 = sshll.u32 %s38_s8, 4  ;;  %s159_s16 = scalar_lea.hbm %s309_s1, 1024  ;;  %s47_s9 = int_to_ptr.vmem [resolvable:$true] %s46_s9 }
  0x25   : > { %s102_s10 = sshll.u32 %s35_s7, 4 }
  0x26   : > { %s37_s2 = scalar_lea.hbm %s309_s1, %s102_s10 }
  0x27   : > { %s157_s13 = scalar_lea.hbm %s37_s2, 16  ;;  %p160_p12 = scmp.lt.u32.totalorder %s37_s2, %s309_s1 }
  0x28   : > { %p158_p11 = scmp.ne.s32.totalorder %s37_s2, %s157_s13  ;;  %p161_p13 = scmp.lt.u32.totalorder %s159_s16, %s157_s13 }
  0x29   : > { %p163_p1 = scmp.lt.u32.totalorder %s157_s13, %s37_s2 }
  0x2a   : > { %p162_p0 = por %p161_p13, %p160_p12 }
  0x2c   : > { %p164_p2 = por %p163_p1, %p162_p0 }
  0x2e   : > { %p165_p3 = pnand %p164_p2, %p158_p11 }
  0x30   : > { %168 = shalt.err (!%p165_p3)  }
  0x31   : > { %s169_s19 = scalar_lea.vmem %s47_s9, 16  ;;  %s229_s20 = smov [#allocation2]  }
  0x32   : > { %p170_p4 = scmp.ne.s32.totalorder %s47_s9, %s169_s19  ;;  %s171_s21 = sshll.u32 %s229_s20, 4  ;;  %s172_s21 = int_to_ptr.vmem [resolvable:$false] %s171_s21 }
  0x33   : > { %s173_s22 = scalar_lea.vmem %s172_s21, 256  ;;  %p174_p5 = scmp.lt.s32.totalorder %s47_s9, %s172_s21 }
  0x34   : > { %p175_p6 = scmp.lt.s32.totalorder %s173_s22, %s169_s19 }
  0x36   : > { %p176_p7 = por %p175_p6, %p174_p5 }
  0x38   : > { %p177_p8 = pnand %p176_p7, %p170_p4 }
  0x3a   : > { %180 = shalt.err (!%p177_p8)  }
  0x3b   : > { %49 = dma.hbm_to_vmem [thread:$0]  %s37_s2, 16, %s47_s9, [#allocation3] }
  0x3c   : > { %s33_s6 = sadd.s32 1, %s221_s6  }
  0x3d   : > { %p30_p9 = scmp.ge.s32.totalorder %s33_s6, 16  }
  0x3e   :  { %s223_s23 = smov (%p30_p9), 0  }
  0x3f   :  { %32 = sbr.rel (!%p30_p9) target bundleno = 31 (0x1f), region = 48 }
  0x46 LB: > { %215 = dma.done.wait [#allocation3], 16  ;;  %s225_s23 = sphi %s223_s23, %s55_s23  }
  0x47   : > { %216 = vsyncadd [#allocation3], 4294967280  ;;  %s55_s23 = sadd.s32 1, %s225_s23  }
  0x48   : > { %p52_p10 = scmp.ge.s32.totalorder %s55_s23, 16  }
  0x49   :  { %v59_v0 = vld [vmem:[#allocation2] sm:$0xff] (%p52_p10)  ;;  %v61_v1 = vld [vmem:[#allocation6] sm:$0xff] (%p52_p10)  ;;  %v60_v2 = vld [vmem:[#allocation2 + $0x8] sm:$0xff] (%p52_p10)  ;;  %s230_s24 = smov (%p52_p10), [#allocation9]  }
  0x4a   :  { %54 = sbr.rel (!%p52_p10) target bundleno = 70 (0x46), region = 59  ;;  %v62_v3 = vadd.f32 (%p52_p10), %v61_v1, %v59_v0  ;;  %v63_v4 = vadd.f32 (%p52_p10), %v61_v1, %v60_v2  ;;  %s71_s25 = sshll.u32 (%p52_p10), %s230_s24, 4  ;;  %s72_s25 = int_to_ptr.vmem [resolvable:$true] %s71_s25 }
  0x4b   :  { %s181_s1 = scalar_lea.vmem (%p52_p10), %s72_s25, 256  ;;  %p186_p12 = scmp.lt.s32.totalorder (%p52_p10), %s72_s25, %s72_s25 }
  0x4c   :  { %64 = vst [vmem:[#allocation9] sm:$0xff] (%p52_p10), %v62_v3  ;;  %65 = vst [vmem:[#allocation9 + $0x8] sm:$0xff] (%p52_p10), %v63_v4  ;;  %p182_p11 = scmp.ne.s32.totalorder (%p52_p10), %s72_s25, %s181_s1  ;;  %p187_p13 = scmp.lt.s32.totalorder (%p52_p10), %s181_s1, %s181_s1 }
  0x4e   :  { %p188_p0 = por (%p52_p10), %p187_p13, %p186_p12 }
  0x50   :  { %p189_p1 = pnand (%p52_p10), %p188_p0, %p182_p11 }
  0x52   :  { %192 = shalt.err (!%p189_p1)
}
  0x53   :  { %s193_s28 = scalar_lea.hbm %s311_s3, 256 }
  0x54   :  { %p194_p2 = scmp.ne.s32.totalorder %s311_s3, %s193_s28  ;;  %p197_p3 = scmp.lt.u32.totalorder %s193_s28, %s311_s3 }
  0x56   :  { %p199_p4 = pnand %p197_p3, %p194_p2 }
  0x58   :  { %202 = shalt.err (!%p199_p4)
}
  0x59   :  { %s231_s5 = smov 128   ;;  %s232_s6 = smov 8  }
  0x5a   :  { %77 = dma.vmem_to_hbm [thread:$0]  %s72_s25, 256, %s311_s3, [#allocation8], %s231_s5, %s231_s5, %s232_s6  }
  0x5b   :  { %217 = dma.done.wait [#allocation8], 256  }
  0x5c   :  { %218 = vsyncadd [#allocation8], 4294967040 }
  0x5d   :  { %81 = vsyncpa [#allocation7], 1 }
  0x5e   :  { %82 = vsyncpa [#allocation8], 1 }
  0x5f   :  { %83 = vsyncmov [#allocation3] }
  0x62   :  { %s84_s9 = vpop.sfrf %83 }
  0x63   :  { %p103_p5 = scmp.ne.s32.totalorder %s84_s9, 0 }
  0x65   :  { %88 = shalt.err (%p103_p5)  }

</bundles_post_ra>
